<compile_context>
chip_gen: v7x
topology: tpu7x:2x2x1
jax: 0.10.0
libtpu: 0.0.40
codegen_flags: <defaults>
</compile_context>

<pallas_src>
import functools

import jax
import jax.numpy as jnp
from jax.experimental import pallas as pl
from jax.experimental.pallas import tpu as pltpu


def _shuffle_copy_kernel(x_ref, o_ref):
    # x_ref: (Bt, 1, cpg, HW) -- one input group's channels for Bt batches.
    # o_ref: (Bt, cpg, HW)    -- destination block selected by the out
    #                            BlockSpec; the permutation lives entirely in
    #                            the index maps, so this is one vector copy.
    o_ref[...] = x_ref[:, 0]


def _fallback_kernel(x_ref, o_ref, *, groups, cpg):
    # Used only when H*W is not a multiple of 128.  Whole (C, HW) block per
    # grid step; static per-channel copies (small C in practice).
    for c_out in range(groups * cpg):
        i, j = c_out // groups, c_out % groups
        o_ref[:, c_out, :] = x_ref[:, j * cpg + i, :]


def _pick_batch_block(batch, bytes_per_batch, target_bytes=4 * 1024 * 1024):
    """Largest divisor of `batch` whose per-step block stays <= target_bytes."""
    best = 1
    for d in range(1, batch + 1):
        if batch % d == 0 and d * bytes_per_batch <= target_bytes:
            best = d
    return best


def _channel_shuffle_fast(x, groups):
    b, c, h, w = x.shape
    cpg = c // groups
    hw = h * w
    itemsize = jnp.dtype(x.dtype).itemsize

    bt = _pick_batch_block(b, cpg * hw * itemsize)
    grid = (b // bt, groups)

    # Pure metadata reshape: split channels as (groups, cpg) on the input.
    x_grp = x.reshape(b, groups, cpg, hw)

    out_flat = pl.pallas_call(
        _shuffle_copy_kernel,
        out_shape=jax.ShapeDtypeStruct((b, cpg, groups * hw), x.dtype),
        grid=grid,
        in_specs=[
            pl.BlockSpec((bt, 1, cpg, hw), lambda bi, gi: (bi, gi, 0, 0)),
        ],
        out_specs=pl.BlockSpec((bt, cpg, hw), lambda bi, gi: (bi, 0, gi)),
        compiler_params=pltpu.CompilerParams(
            dimension_semantics=("parallel", "parallel"),
            vmem_limit_bytes=32 * 1024 * 1024,
        ),
    )(x_grp)

    return out_flat.reshape(b, c, h, w)


def _channel_shuffle_fallback(x, groups):
    b, c, h, w = x.shape
    cpg = c // groups
    hw = h * w
    itemsize = jnp.dtype(x.dtype).itemsize

    bt = _pick_batch_block(b, c * hw * itemsize)
    grid = (b // bt,)

    x_flat = x.reshape(b, c, hw)
    kernel = functools.partial(_fallback_kernel, groups=groups, cpg=cpg)

    out_flat = pl.pallas_call(
        kernel,
        out_shape=jax.ShapeDtypeStruct((b, c, hw), x.dtype),
        grid=grid,
        in_specs=[pl.BlockSpec((bt, c, hw), lambda bi: (bi, 0, 0))],
        out_specs=pl.BlockSpec((bt, c, hw), lambda bi: (bi, 0, 0)),
        compiler_params=pltpu.CompilerParams(
            dimension_semantics=("parallel",),
            vmem_limit_bytes=32 * 1024 * 1024,
        ),
    )(x_flat)

    return out_flat.reshape(b, c, h, w)


@functools.partial(jax.jit, static_argnums=(1,))
def channel_shuffle(x, groups):
    """NCHW channel shuffle, identical semantics to the PyTorch module."""
    b, c, h, w = x.shape
    if c % groups != 0:
        raise ValueError("channels must be divisible by groups")
    cpg = c // groups
    if groups == 1 or cpg == 1:
        return x  # permutation is the identity
    if (h * w) % 128 == 0:
        return _channel_shuffle_fast(x, groups)
    return _channel_shuffle_fallback(x, groups)


def channel_shuffle_ref(x, groups):
    b, c, h, w = x.shape
    cpg = c // groups
    y = x.reshape(b, groups, cpg, h, w)
    y = jnp.transpose(y, (0, 2, 1, 3, 4))
    return y.reshape(b, c, h, w)


if __name__ == "__main__":
    key = jax.random.PRNGKey(0)
    k1, k2, k3 = jax.random.split(key, 3)

    # Primary case (matches the module spec's small-shape usage) -> fast path.
    B, C, H, W, GROUPS = 2, 4, 16, 16, 2
    x = jax.random.normal(k1, (B, C, H, W), dtype=jnp.float32)
    out = jax.block_until_ready(channel_shuffle(x, GROUPS))
    ref = channel_shuffle_ref(x, GROUPS)
    assert out.shape == ref.shape and out.dtype == ref.dtype
    assert jnp.array_equal(out, ref), "mismatch vs reference channel shuffle"

    # Second configuration: groups=3, HW=128 -> fast path with other blocking.
    x2 = jax.random.normal(k2, (3, 6, 8, 16), dtype=jnp.float32)
    out2 = jax.block_until_ready(channel_shuffle(x2, 3))
    assert jnp.array_equal(out2, channel_shuffle_ref(x2, 3)), "mismatch (case 2)"

    # Third configuration: HW not a multiple of 128 -> fallback path.
    x3 = jax.random.normal(k3, (2, 6, 4, 8), dtype=jnp.float32)
    out3 = jax.block_until_ready(channel_shuffle(x3, 3))
    assert jnp.array_equal(out3, channel_shuffle_ref(x3, 3)), "mismatch (case 3)"

    print("KERNEL_OK")
</pallas_src>

<mosaic_0001>
module attributes {stable_mosaic.version = 11 : i64} {
  func.func @_shuffle_copy_kernel(%arg0: i32, %arg1: i32, %arg2: memref<2x1x2x256xf32, #tpu.memory_space<vmem>>, %arg3: memref<2x2x256xf32, #tpu.memory_space<vmem>>) attributes {dimension_semantics = [#tpu.dimension_semantics<parallel>, #tpu.dimension_semantics<parallel>], iteration_bounds = array<i64: 1, 2>, scalar_prefetch = 0 : i64, scratch_operands = 0 : i64, tpu.core_type = #tpu.core_type<tc>, window_params = [{transform_indices = @transform_0, window_bounds = array<i64: 2, 1, 2, 256>}, {transform_indices = @transform_1, window_bounds = array<i64: 2, 2, 256>}]} {
    %c0 = arith.constant 0 : index
    %c0_0 = arith.constant 0 : index
    %c0_1 = arith.constant 0 : index
    %c0_2 = arith.constant 0 : index
    %0 = vector.load %arg2[%c0, %c0_0, %c0_1, %c0_2] : memref<2x1x2x256xf32, #tpu.memory_space<vmem>>, vector<2x1x2x256xf32>
    %1 = vector.shape_cast %0 : vector<2x1x2x256xf32> to vector<2x2x256xf32>
    %c0_3 = arith.constant 0 : index
    %c0_4 = arith.constant 0 : index
    %c0_5 = arith.constant 0 : index
    %2 = vector.load %arg3[%c0_3, %c0_4, %c0_5] : memref<2x2x256xf32, #tpu.memory_space<vmem>>, vector<2x2x256xf32>
    tpu.vector_store %arg3[%c0_3, %c0_4, %c0_5], %1 {strides = array<i32>} : memref<2x2x256xf32, #tpu.memory_space<vmem>>, vector<2x2x256xf32>,
    return
  }
  func.func @transform_0(%arg0: i32, %arg1: i32) -> (i32, i32, i32, i32) {
    %c0_i32 = arith.constant 0 : i32
    %c0_i32_0 = arith.constant 0 : i32
    %c0_i32_1 = arith.constant 0 : i32
    return %arg0, %arg1, %c0_i32, %c0_i32_0 : i32, i32, i32, i32
  }
  func.func @transform_1(%arg0: i32, %arg1: i32) -> (i32, i32, i32) {
    %c0_i32 = arith.constant 0 : i32
    %c0_i32_0 = arith.constant 0 : i32
    return %arg0, %c0_i32, %arg1 : i32, i32, i32
  }
}

</mosaic_0001>

<bundles_post_ra>
// kernel: channel_shuffle.1
= control target key start
LH: loop header
LB: loop body
LE: loop exit
PB: predicated region body
PF: predicated region fallthrough
CT: control target
= control target key end

     0   :  { %s417_s6 = smov 0   ;;  %s419_s7 = smov 0   ;;  %s489_s0 = inlined_call_operand.vmem [shape: f32[2,2,2,256], index: 0, kind: input, shape index: {}]   ;;  %s490_s1 = inlined_call_operand.vmem [shape: f32[2,2,512], index: 1, kind: output, shape index: {}]  }
   0x1   :  { %s421_s8 = smov 0   ;;  %s423_s9 = smov 0  }
   0x2   :  { %s425_s10 = smov 0  }
   0x3 LB: > { %s20_s11 = sadd.s32 1, %s401_s9  ;;  %s310_s12 = sadd.s32 4294967295, %s405_s10   ;;  %s405_s10 = sphi %s425_s10, %s11_s10   ;;  %s401_s9 = sphi %s423_s9, %s495_s9   ;;  %s397_s8 = sphi %s421_s8, %s494_s8   ;;  %s393_s7 = sphi %s419_s7, %s493_s7   ;;  %s389_s6 = sphi %s417_s6, %s492_s6  }
   0x4   : > { %p21_p0 = scmp.ge.s32.totalorder %s20_s11, 2  ;;  %p39_p1 = scmp.ne.s32.totalorder %s393_s7, %s389_s6 }
   0x5   : > { %p40_p2 = scmp.eq.s32.totalorder %s405_s10, 0  ;;  %p71_p4 = scmp.eq.s32.totalorder %s310_s12, 1 }
   0x6   : > { %s497_s11 = smov (%p21_p0, %s20_s11), 0  ;;  %s32_s14 = sadd.s32 1, %s393_s7 }
   0x7   : > { %p41_p3 = por %p40_p2, %p39_p1  ;;  %s28_s13 = ssub.s32 %s401_s9, %s497_s11 }
   0x8   : > { %p30_p5 = scmp.eq.s32.totalorder %s28_s13, 0  ;;  %p452_p6 = por %p71_p4, %p39_p1 }
   0x9   : > { %p313_p7 = scmp.ge.s32.totalorder %s405_s10, 2 }
   0xa   : > { %s457_s16 = scalar_select %p30_p5, %s393_s7, %s32_s14  }
   0xb   : > { %93 = sbr.rel (%p313_p7) target bundleno = 25 (0x19), region = 16 }
  0x12   : > { %96 = sbr.rel (!%p41_p3) target bundleno = 25 (0x19), region = 20  ;;  %s98_s17 = sand.u32 (%p41_p3), 1, %s393_s7  }
  0x13   : > { %s325_s18 = sshll.u32 (%p41_p3), %s401_s9, 2  ;;  %s314_s19 = sshll.u32 (%p41_p3), %s98_s17, 3 }
  0x14   : > { %s106_s22 = scalar_lea.vmem (%p41_p3), %s489_s0, %s325_s18  ;;  %s100_s23 = scalar_lea.vmem (%p41_p3), [#allocation2], %s314_s19 }
  0x15   : > { %v122_v0 = vld [vmem:[%s106_s22] sm:$0xf] (%p41_p3)  ;;  %v124_v1 = vld [vmem:[%s106_s22 + $0x8] sm:$0xf] (%p41_p3) }
  0x16   : > { %123 = vst [vmem:[%s100_s23] sm:$0xf] (%p41_p3), %v122_v0  ;;  %125 = vst [vmem:[%s100_s23 + $0x4] sm:$0xf] (%p41_p3), %v124_v1 }
  0x19 PF: > { %p317_p8 = scmp.ge.s32.totalorder %s405_s10, 1  ;;  %p151_p9 = scmp.lt.s32.totalorder %s405_s10, 3 }
  0x1b   : > { %p152_p10 = pnand %p317_p8, %p151_p9 }
  0x1c   : > { %s158_s24 = sand.u32 (!%p152_p10), 1, %s389_s6  }
  0x1d   : > { %155 = sbr.rel (%p152_p10) target bundleno = 43 (0x2b), region = 61  ;;  %s318_s25 = sshll.u32 (!%p152_p10), %s158_s24, 3 }
  0x1e   : > { %s160_s26 = scalar_lea.vmem (!%p152_p10), [#allocation2], %s318_s25  ;;  %s175_s27 = scalar_lea.vmem (!%p152_p10), [#allocation3], %s318_s25 }
  0x1f   : > { %v179_v2 = vld [vmem:[%s160_s26] sm:$0xff] (!%p152_p10)  }
  0x20   : > { %181 = vst [vmem:[%s175_s27] sm:$0xff] (!%p152_p10), %v179_v2  }
  0x24   : > { %189 = sbr.rel (!%p452_p6) target bundleno = 43 (0x2b), region = 69  ;;  %s326_s28 = sshll.u32 (%p452_p6), %s397_s8, 2 }
  0x25   : > { %s195_s2 = scalar_lea.vmem (%p452_p6), %s490_s1, %s326_s28 }
  0x27   : > { %v211_v3 = vld [vmem:[%s175_s27] sm:$0xf] (%p452_p6)  ;;  %v213_v4 = vld [vmem:[%s175_s27 + $0x4] sm:$0xf] (%p452_p6) }
  0x28   : > { %212 = vst [vmem:[%s195_s2] sm:$0xf] (%p452_p6), %v211_v3  ;;  %214 = vst [vmem:[%s195_s2 + $0x8] sm:$0xf] (%p452_p6), %v213_v4 }
  0x2b PF: > { %s11_s10 = sadd.s32 1, %s405_s10   ;;  %s492_s6 = smov %s393_s7 }
  0x2c   : > { %p8_p11 = scmp.ge.s32.totalorder %s11_s10, 4   ;;  %s493_s7 = smov %s457_s16 }
  0x2d   : > { %s494_s8 = smov %s401_s9  ;;  %s495_s9 = smov %s497_s11 }
  0x2e   :  { %10 = sbr.rel (!%p8_p11) target bundleno = 3 (0x3), region = 141 }

</bundles_post_ra>
